<compile_context>
chip_gen: v7x
topology: tpu7x:2x2x1
jax: 0.10.0
libtpu: 0.0.40
codegen_flags: <defaults>
</compile_context>

<pallas_src>
import jax
import jax.numpy as jnp
from jax.experimental import pallas as pl
from jax.experimental.pallas import tpu as pltpu

_MIB = 1024 * 1024


def _minus_kernel(a_ref, b_ref, o_ref):
    # Elementwise hot path on the VPU over the whole VMEM tile.
    o_ref[...] = a_ref[...] - b_ref[...]


def _sublane_multiple(dtype) -> int:
    # Native sublane tile multiple per element width: f32->8, bf16->16, int8/fp8->32.
    itemsize = jnp.dtype(dtype).itemsize
    assert itemsize in (1, 2, 4), f"Minus3D: unsupported dtype {dtype}"
    return {4: 8, 2: 16, 1: 32}[itemsize]


def _vmem_budget():
    """(max_tile_bytes_per_operand, vmem_limit_bytes), generation-aware.

    v5e/v6e have 128 MiB physical VMEM -> 8 MiB tiles (3 operands x 2 buffers
    = 48 MiB) amortize per-step overhead better.  v7x has 64 MiB physical ->
    keep 4 MiB tiles / 32 MiB scoped.  Conservative fallback fits everywhere.
    """
    try:
        info = pltpu.get_tpu_info()
        vmem = getattr(info, "vmem_capacity_bytes", None)
        if vmem is not None and vmem >= 96 * _MIB:
            return 8 * _MIB, 64 * _MIB
    except Exception:
        pass
    return 4 * _MIB, 32 * _MIB


def _pick_row_tile(rows: int, sub: int, tb_cap: int) -> int:
    """Largest legal row tile under the VMEM cap, with >=2 grid steps when possible."""
    if rows <= tb_cap:
        tb = rows                                  # full dim -> always legal
    else:
        tb = max(sub, (tb_cap // sub) * sub)       # partial tile -> multiple of sub
    # v7x megacore: "parallel" shards grid steps across 2 TCs; a 1-step grid
    # leaves one TC idle.  Halve the tile (keeping legality) if we can.
    if pl.cdiv(rows, tb) < 2 and rows > sub:
        half = max(sub, ((tb // 2) // sub) * sub)
        if half < rows:
            tb = half
    return tb


def _minus2d_pallas(a2: jax.Array, b2: jax.Array, sub: int) -> jax.Array:
    rows, cols = a2.shape
    itemsize = jnp.dtype(a2.dtype).itemsize
    max_tile_bytes, vmem_limit = _vmem_budget()

    # VMEM footprint uses the lane-padded width (ragged cols pad to 128 multiple).
    padded_cols = pl.cdiv(cols, 128) * 128
    row_bytes = padded_cols * itemsize
    tb_cap = max(1, max_tile_bytes // row_bytes)
    tb = _pick_row_tile(rows, sub, tb_cap)
    grid = (pl.cdiv(rows, tb),)

    return pl.pallas_call(
        _minus_kernel,
        out_shape=jax.ShapeDtypeStruct((rows, cols), a2.dtype),
        grid_spec=pltpu.PrefetchScalarGridSpec(
            num_scalar_prefetch=0,
            grid=grid,
            in_specs=[
                pl.BlockSpec((tb, cols), lambda i: (i, 0)),
                pl.BlockSpec((tb, cols), lambda i: (i, 0)),
            ],
            out_specs=pl.BlockSpec((tb, cols), lambda i: (i, 0)),
        ),
        compiler_params=pltpu.CompilerParams(
            dimension_semantics=("parallel",),   # shards grid steps across TCs on v7x
            vmem_limit_bytes=vmem_limit,
        ),
        cost_estimate=pl.CostEstimate(
            flops=rows * cols,
            transcendentals=0,
            bytes_accessed=3 * rows * cols * itemsize,
        ),
    )(a2, b2)


def minus3d(a: jax.Array, b: jax.Array) -> jax.Array:
    """Pallas TPU Minus3D: out = a - b, elementwise, matching shapes (e.g. [B, S, H])."""
    assert a.shape == b.shape, "Minus3D expects two tensors of identical shape"
    assert a.dtype == b.dtype, "Minus3D expects matching dtypes"

    orig_shape = a.shape
    sub = _sublane_multiple(a.dtype)
    n = a.size

    # Tiny inputs: launch + grid-step overhead dominates; a fused XLA subtract
    # is strictly faster (and fusable with neighbouring ops).
    if n < 8 * 128 * sub:
        return a - b

    if n % 128 == 0:
        # Free bitcast to a lane-dense (rows, 128) slab -> full-width unmasked
        # stores, no padding, no extra HBM passes.  Covers every hidden size
        # that is a multiple of 128.
        rows = n // 128
        out2 = _minus2d_pallas(a.reshape(rows, 128), b.reshape(rows, 128), sub)
        return out2.reshape(orig_shape)

    if a.ndim >= 2:
        # Ragged last dim: keep the natural (batch*seq, hidden) view (still a
        # free reshape).  The partial 128-lane group gets masked stores, but
        # there are zero extra wrapper-side HBM passes (no pad/slice/concat).
        cols = orig_shape[-1]
        rows = n // cols
        out2 = _minus2d_pallas(a.reshape(rows, cols), b.reshape(rows, cols), sub)
        return out2.reshape(orig_shape)

    # 1-D input whose length is not a multiple of 128 — out of scope for the
    # 3-D brick; plain subtract is already roofline-bound here.
    return a - b


if __name__ == "__main__":
    key = jax.random.PRNGKey(0)
    keys = jax.random.split(key, 8)

    # 1) Brick-sized 3-D inputs [batch, seq, hidden] (tiny fast-path).
    x = jax.random.normal(keys[0], (2, 8, 32), dtype=jnp.float32)
    y = jax.random.normal(keys[1], (2, 8, 32), dtype=jnp.float32)
    out = jax.block_until_ready(minus3d(x, y))
    assert out.shape == x.shape and out.dtype == x.dtype
    assert jnp.allclose(out, x - y, atol=1e-6, rtol=1e-6), "mismatch (tiny path)"

    # 2) hidden % 128 == 0 -> lane-dense Pallas path, grid split for megacore.
    x = jax.random.normal(keys[2], (4, 64, 256), dtype=jnp.float32)
    y = jax.random.normal(keys[3], (4, 64, 256), dtype=jnp.float32)
    out = jax.block_until_ready(minus3d(x, y))
    assert jnp.allclose(out, x - y, atol=1e-6, rtol=1e-6), "mismatch (aligned path)"

    # 3) Ragged hidden but total elements % 128 == 0 -> flat (rows, 128) path.
    x = jax.random.normal(keys[4], (4, 64, 160), dtype=jnp.float32)
    y = jax.random.normal(keys[5], (4, 64, 160), dtype=jnp.float32)
    out = jax.block_until_ready(minus3d(x, y))
    assert jnp.allclose(out, x - y, atol=1e-6, rtol=1e-6), "mismatch (flat path)"

    # 4) Fully ragged shape -> masked-lane (rows, hidden) Pallas path.
    x = jax.random.normal(keys[6], (5, 37, 96), dtype=jnp.float32)
    y = jax.random.normal(keys[7], (5, 37, 96), dtype=jnp.float32)
    out = jax.block_until_ready(minus3d(x, y))
    assert jnp.allclose(out, x - y, atol=1e-6, rtol=1e-6), "mismatch (ragged path)"

    print("KERNEL_OK")
</pallas_src>

<mosaic_0001>
module attributes {stable_mosaic.version = 11 : i64} {
  func.func @_minus_kernel(%arg0: i32, %arg1: memref<256x128xf32, #tpu.memory_space<vmem>>, %arg2: memref<256x128xf32, #tpu.memory_space<vmem>>, %arg3: memref<256x128xf32, #tpu.memory_space<vmem>>) attributes {dimension_semantics = [#tpu.dimension_semantics<parallel>], iteration_bounds = array<i64: 2>, scalar_prefetch = 0 : i64, scratch_operands = 0 : i64, tpu.core_type = #tpu.core_type<tc>, window_params = [{transform_indices = @transform_0, window_bounds = array<i64: 256, 128>}, {transform_indices = @transform_1, window_bounds = array<i64: 256, 128>}, {transform_indices = @transform_2, window_bounds = array<i64: 256, 128>}]} {
    %c0 = arith.constant 0 : index
    %c0_0 = arith.constant 0 : index
    %0 = vector.load %arg1[%c0, %c0_0] : memref<256x128xf32, #tpu.memory_space<vmem>>, vector<256x128xf32>
    %c0_1 = arith.constant 0 : index
    %c0_2 = arith.constant 0 : index
    %1 = vector.load %arg2[%c0_1, %c0_2] : memref<256x128xf32, #tpu.memory_space<vmem>>, vector<256x128xf32>
    %2 = arith.subf %0, %1 : vector<256x128xf32>
    %c0_3 = arith.constant 0 : index
    %c0_4 = arith.constant 0 : index
    %3 = vector.load %arg3[%c0_3, %c0_4] : memref<256x128xf32, #tpu.memory_space<vmem>>, vector<256x128xf32>
    tpu.vector_store %arg3[%c0_3, %c0_4], %2 {strides = array<i32>} : memref<256x128xf32, #tpu.memory_space<vmem>>, vector<256x128xf32>,
    return
  }
  func.func @transform_0(%arg0: i32) -> (i32, i32) {
    %c0_i32 = arith.constant 0 : i32
    %c0_i32_0 = arith.constant 0 : i32
    return %arg0, %c0_i32 : i32, i32
  }
  func.func @transform_1(%arg0: i32) -> (i32, i32) {
    %c0_i32 = arith.constant 0 : i32
    %c0_i32_0 = arith.constant 0 : i32
    return %arg0, %c0_i32 : i32, i32
  }
  func.func @transform_2(%arg0: i32) -> (i32, i32) {
    %c0_i32 = arith.constant 0 : i32
    %c0_i32_0 = arith.constant 0 : i32
    return %arg0, %c0_i32 : i32, i32
  }
}

</mosaic_0001>

<bundles_post_ra>
// kernel: tpu_custom_call.1
= control target key start
LH: loop header
LB: loop body
LE: loop exit
PB: predicated region body
PF: predicated region fallthrough
CT: control target
= control target key end

     0   :  { %7 = vsyncpa [#allocation3], 0  ;;  %s999_s0 = inlined_call_operand.hbm [shape: f32[512,128], index: 0, kind: input, shape index: {}]   ;;  %s1000_s1 = inlined_call_operand.hbm [shape: f32[512,128], index: 1, kind: input, shape index: {}]   ;;  %s1001_s2 = inlined_call_operand.hbm [shape: f32[512,128], index: 2, kind: output, shape index: {}]  }
   0x1   :  { %9 = vsyncpa [#allocation3 + $0x1], 0 }
   0x2   :  { %10 = vsyncpa [#allocation6], 0 }
   0x3   :  { %12 = vsyncpa [#allocation6 + $0x1], 0 }
   0x4   :  { %13 = vsyncpa [#allocation4], 0 }
   0x5   :  { %15 = vsyncpa [#allocation4 + $0x1], 0  ;;  %s673_s9 = smov 0   ;;  %s675_s10 = smov 0  }
   0x6   :  { %s677_s11 = smov 0   ;;  %s679_s12 = smov 0  }
   0x7 LB: > { %s694_s13 = sadd.s32 4294967295, %s649_s12   ;;  %s443_s14 = sadd.s32 4294967294, %s649_s12   ;;  %s649_s12 = sphi %s679_s12, %s1017_s12   ;;  %s645_s11 = sphi %s677_s11, %s1016_s11   ;;  %s641_s10 = sphi %s675_s10, %s1015_s10   ;;  %s637_s9 = sphi %s673_s9, %s1014_s9  }
   0x8   : > { %s698_s15 = sadd.s32 1, %s649_s12   ;;  %s28_s16 = sadd.s32 1, %s645_s11 }
   0x9   : > { %s25_s17 = ssub.s32 %s649_s12, %s698_s15  ;;  %p35_p0 = scmp.ne.s32.totalorder %s645_s11, %s641_s10 }
   0xa   : > { %p26_p1 = scmp.eq.s32.totalorder %s25_s17, 0  ;;  %p36_p2 = scmp.eq.s32.totalorder %s649_s12, 0 }
   0xb   : > { %p41_p3 = scmp.ne.s32.totalorder %s641_s10, %s637_s9  ;;  %p42_p4 = scmp.eq.s32.totalorder %s694_s13, 0 }
   0xc   : > { %s710_s18 = scalar_select %p26_p1, %s645_s11, %s28_s16  }
   0xd   : > { %p712_p5 = por %p36_p2, %p35_p0  ;;  %p716_p6 = por %p42_p4, %p41_p3 }
   0xe   : > { %p91_p7 = scmp.eq.s32.totalorder %s694_s13, 1  ;;  %p97_p8 = scmp.eq.s32.totalorder %s443_s14, 1 }
   0xf   : > { %s1005_s20 = scalar_select %p716_p6, 1, 0 }
  0x10   : > { %p481_p10 = scmp.lt.s32.totalorder %s649_s12, 2  ;;  %p723_p11 = por %p91_p7, %p35_p0 }
  0x11   : > { %p727_p12 = por %p97_p8, %p41_p3  ;;  %s732_s23 = sand.u32 1, %s645_s11  }
  0x12   : > { %s1006_s21 = scalar_select %p723_p11, 1, 0 }
  0x13   : > { %s1007_s22 = scalar_select %p727_p12, 1, 0 }
  0x14   : > { %s461_s24 = sshll.u32 %s649_s12, 12  ;;  %s446_s25 = sshll.u32 %s732_s23, 8 }
  0x15   : > { %s741_s28 = scalar_lea.hbm %s999_s0, %s461_s24  ;;  %s121_s29 = scalar_lea.vmem [#allocation2], %s446_s25 }
  0x16   : > { %s128_s30 = sshll.u32 %s121_s29, 4  ;;  %p747_p13 = pnand %p481_p10, %p712_p5  ;;  %s751_s30 = int_to_ptr.vmem [resolvable:$true] %s128_s30 }
  0x17   : > { %s118_s4 = scalar_lea.sflag [#allocation3], %s732_s23  ;;  %s519_s5 = scalar_lea.hbm %s741_s28, 4096 }
  0x18   : > { %p520_p0 = scmp.ne.s32.totalorder %s741_s28, %s519_s5  ;;  %p521_p1 = pneg %p747_p13 }
  0x19   : > { %s524_s8 = scalar_lea.hbm %s999_s0, 8192  ;;  %p525_p4 = scmp.lt.u32.totalorder %s741_s28, %s999_s0 }
  0x1a   : > { %p522_p2 = pnand %p521_p1, %p520_p0  ;;  %p526_p5 = scmp.lt.u32.totalorder %s524_s8, %s519_s5 }
  0x1b   : > { %p528_p8 = scmp.lt.u32.totalorder %s519_s5, %s741_s28 }
  0x1c   : > { %p523_p3 = pneg %p522_p2  ;;  %p527_p7 = por %p526_p5, %p525_p4 }
  0x1e   : > { %p529_p10 = por %p528_p8, %p527_p7 }
  0x20   : > { %p530_p9 = pnand %p529_p10, %p523_p3 }
  0x22   : > { %533 = shalt.err (!%p530_p9)
}
  0x23   : > { %s534_s17 = scalar_lea.vmem %s751_s30, 4096  ;;  %s651_s19 = smov [#allocation2]  }
  0x24   : > { %p535_p0 = scmp.ne.s32.totalorder %s751_s30, %s534_s17  ;;  %s539_s26 = sshll.u32 %s651_s19, 4  ;;  %s540_s26 = int_to_ptr.vmem [resolvable:$false] %s539_s26 }
  0x25   : > { %s541_s27 = scalar_lea.vmem %s540_s26, 8192  ;;  %p542_p11 = scmp.lt.s32.totalorder %s751_s30, %s540_s26 }
  0x26   : > { %p537_p2 = pnand %p535_p0, %p521_p1  ;;  %p543_p4 = scmp.lt.s32.totalorder %s541_s27, %s534_s17 }
  0x28   : > { %p538_p12 = pneg %p537_p2  ;;  %p544_p5 = por %p543_p4, %p542_p11 }
  0x2a   : > { %p545_p7 = pnand %p544_p5, %p538_p12 }
  0x2c   : > { %548 = shalt.err (!%p545_p7)
}
  0x2d   : > { %s652_s29 = smov 128   ;;  %s653_s5 = smov 8  }
  0x2e   : > { %473 = dma.hbm_to_vmem [thread:$0]  (!%p747_p13), %s741_s28, 4096, %s751_s30, %s118_s4, %s652_s29, %s652_s29, %s653_s5  }
  0x2f   : > { %p452_p9 = scmp.ge.s32.totalorder %s649_s12, 1  ;;  %p157_p11 = scmp.lt.s32.totalorder %s649_s12, 3 }
  0x30   : > { %s795_s14 = scalar_lea.hbm %s1000_s1, %s461_s24  ;;  %s142_s16 = scalar_lea.vmem [#allocation5], %s446_s25 }
  0x31   : > { %p786_p12 = pnand %p452_p9, %p157_p11  ;;  %s149_s17 = sshll.u32 %s142_s16, 4  ;;  %s799_s17 = int_to_ptr.vmem [resolvable:$true] %s149_s17 }
  0x32   : > { %s139_s28 = scalar_lea.sflag [#allocation6], %s732_s23  ;;  %s549_s30 = scalar_lea.hbm %s795_s14, 4096 }
  0x33   : > { %p550_p3 = scmp.ne.s32.totalorder %s795_s14, %s549_s30  ;;  %s554_s24 = scalar_lea.hbm %s1000_s1, 8192 }
  0x34   : > { %p555_p0 = scmp.lt.u32.totalorder %s795_s14, %s1000_s1  ;;  %p556_p2 = scmp.lt.u32.totalorder %s554_s24, %s549_s30 }
  0x35   : > { %p552_p8 = pnand %p550_p3, %p521_p1  ;;  %p558_p5 = scmp.lt.u32.totalorder %s549_s30, %s795_s14 }
  0x36   : > { %p557_p4 = por %p556_p2, %p555_p0 }
  0x37   : > { %p553_p10 = pneg %p552_p8 }
  0x38   : > { %p559_p7 = por %p558_p5, %p557_p4 }
  0x3a   : > { %p560_p9 = pnand %p559_p7, %p553_p10 }
  0x3c   : > { %563 = shalt.err (!%p560_p9)
}
  0x3d   : > { %s564_s25 = scalar_lea.vmem %s799_s17, 4096  ;;  %s654_s7 = smov [#allocation5]  }
  0x3e   : > { %p565_p11 = scmp.ne.s32.totalorder %s799_s17, %s564_s25  ;;  %s569_s8 = sshll.u32 %s654_s7, 4  ;;  %s570_s8 = int_to_ptr.vmem [resolvable:$false] %s569_s8 }
  0x3f   : > { %s571_s16 = scalar_lea.vmem %s570_s8, 8192  ;;  %p572_p6 = scmp.lt.s32.totalorder %s799_s17, %s570_s8 }
  0x40   : > { %p567_p3 = pnand %p565_p11, %p521_p1  ;;  %p573_p0 = scmp.lt.s32.totalorder %s571_s16, %s564_s25 }
  0x42   : > { %p568_p8 = pneg %p567_p3  ;;  %p574_p2 = por %p573_p0, %p572_p6 }
  0x44   : > { %p575_p4 = pnand %p574_p2, %p568_p8 }
  0x46   : > { %578 = shalt.err (!%p575_p4)
}
  0x47   : > { %476 = dma.hbm_to_vmem [thread:$0]  (!%p747_p13), %s795_s14, 4096, %s799_s17, %s139_s28, %s652_s29, %s652_s29, %s653_s5  }
  0x48   : > { %161 = sbr.rel (%p786_p12) target bundleno = 124 (0x7c), region = 28  ;;  %s833_s30 = sand.u32 (!%p786_p12), 1, %s641_s10  }
  0x49   : > { %s453_s4 = sshll.u32 (!%p786_p12), %s833_s30, 8  ;;  %s164_s19 = scalar_lea.sflag (!%p786_p12), [#allocation3], %s833_s30 }
  0x4a   : > { %s837_s3 = scalar_lea.vmem (!%p786_p12), [#allocation2], %s453_s4  ;;  %p1010_p6 = scmp.ne.s32.totalorder (!%p786_p12), %s1005_s20, 0 }
  0x4f   : > { %624 = dma.done.wait (%p1010_p6), %s164_s19, 4096  }
  0x50   : > { %626 = vsyncadd (%p1010_p6), %s164_s19, 4294963200  ;;  %s173_s23 = scalar_lea.sflag [#allocation6], %s833_s30  ;;  %s844_s29 = scalar_lea.vmem [#allocation5], %s453_s4 }
  0x51   : > { %628 = dma.done.wait (%p1010_p6), %s173_s23, 4096  }
  0x52   : > { %630 = vsyncadd (%p1010_p6), %s173_s23, 4294963200  ;;  %v205_v0 = vld [vmem:[%s837_s3] sm:$0xff]  ;;  %v206_v2 = vld [vmem:[%s837_s3 + $0x8] sm:$0xff]  ;;  %s859_s20 = scalar_lea.vmem [#allocation7], %s453_s4  ;;  %s463_s5 = sshll.u32 %s694_s13, 12 }
  0x53   : > { %v237_v1 = vld [vmem:[%s844_s29] sm:$0xff]  ;;  %v238_v4 = vld [vmem:[%s844_s29 + $0x8] sm:$0xff]  ;;  %v207_v5 = vld [vmem:[%s837_s3 + $0x10] sm:$0xff]  ;;  %s347_s6 = sshll.u32 %s859_s20, 4  ;;  %s949_s17 = scalar_lea.hbm %s1001_s2, %s463_s5  ;;  %s951_s6 = int_to_ptr.vmem [resolvable:$true] %s347_s6 }
  0x54   : > { %v269_v3 = vsub.f32 %v205_v0, %v237_v1  ;;  %v239_v6 = vld [vmem:[%s844_s29 + $0x10] sm:$0xff]  ;;  %v270_v7 = vsub.f32 %v206_v2, %v238_v4  ;;  %v208_v9 = vld [vmem:[%s837_s3 + $0x18] sm:$0xff]  ;;  %v209_v11 = vld [vmem:[%s837_s3 + $0x20] sm:$0xff]  ;;  %s334_s28 = scalar_lea.sflag [#allocation4], %s833_s30  ;;  %s579_s24 = scalar_lea.vmem %s951_s6, 4096 }
  0x55   : > { %v271_v8 = vsub.f32 %v207_v5, %v239_v6  ;;  %v240_v10 = vld [vmem:[%s844_s29 + $0x18] sm:$0xff]  ;;  %v241_v13 = vld [vmem:[%s844_s29 + $0x20] sm:$0xff]  ;;  %v210_v14 = vld [vmem:[%s837_s3 + $0x28] sm:$0xff]  ;;  %p580_p13 = scmp.ne.s32.totalorder %s951_s6, %s579_s24  ;;  %p1011_p1 = scmp.ne.s32.totalorder %s1006_s21, 0 }
  0x56   : > { %301 = vst [vmem:[%s859_s20] sm:$0xff] %v269_v3  ;;  %v272_v12 = vsub.f32 %v208_v9, %v240_v10  ;;  %v242_v15 = vld [vmem:[%s844_s29 + $0x28] sm:$0xff]  ;;  %302 = vst [vmem:[%s859_s20 + $0x8] sm:$0xff] %v270_v7  ;;  %v273_v16 = vsub.f32 %v209_v11, %v241_v13  ;;  %v211_v18 = vld [vmem:[%s837_s3 + $0x30] sm:$0xff]  ;;  %s655_s26 = smov [#allocation7]  }
  0x57   : > { %303 = vst [vmem:[%s859_s20 + $0x10] sm:$0xff] %v271_v8  ;;  %v274_v17 = vsub.f32 %v210_v14, %v242_v15  ;;  %v243_v19 = vld [vmem:[%s844_s29 + $0x30] sm:$0xff]  ;;  %v212_v20 = vld [vmem:[%s837_s3 + $0x38] sm:$0xff]  ;;  %v213_v23 = vld [vmem:[%s837_s3 + $0x40] sm:$0xff]  ;;  %p581_p12 = pnand %p580_p13, %p1011_p1  ;;  %s583_s27 = sshll.u32 %s655_s26, 4  ;;  %s584_s27 = int_to_ptr.vmem [resolvable:$false] %s583_s27 }
  0x58   : > { %304 = vst [vmem:[%s859_s20 + $0x18] sm:$0xff] %v272_v12  ;;  %v275_v21 = vsub.f32 %v211_v18, %v243_v19  ;;  %v244_v22 = vld [vmem:[%s844_s29 + $0x38] sm:$0xff]  ;;  %v245_v24 = vld [vmem:[%s844_s29 + $0x40] sm:$0xff]  ;;  %305 = vst [vmem:[%s859_s20 + $0x20] sm:$0xff] %v273_v16  ;;  %s585_s25 = scalar_lea.vmem %s584_s27, 8192  ;;  %p586_p5 = scmp.lt.s32.totalorder %s951_s6, %s584_s27 }
  0x59   : > { %306 = vst [vmem:[%s859_s20 + $0x28] sm:$0xff] %v274_v17  ;;  %v276_v25 = vsub.f32 %v212_v20, %v244_v22  ;;  %v277_v26 = vsub.f32 %v213_v23, %v245_v24  ;;  %v214_v27 = vld [vmem:[%s837_s3 + $0x48] sm:$0xff]  ;;  %v215_v29 = vld [vmem:[%s837_s3 + $0x50] sm:$0xff]  ;;  %v216_v32 = vld [vmem:[%s837_s3 + $0x58] sm:$0xff]  ;;  %p582_p10 = pneg %p581_p12  ;;  %p587_p7 = scmp.lt.s32.totalorder %s585_s25, %s579_s24 }
  0x5a   : > { %v246_v28 = vld [vmem:[%s844_s29 + $0x48] sm:$0xff]  ;;  %307 = vst [vmem:[%s859_s20 + $0x30] sm:$0xff] %v275_v21  ;;  %v247_v31 = vld [vmem:[%s844_s29 + $0x50] sm:$0xff]  ;;  %v248_v33 = vld [vmem:[%s844_s29 + $0x58] sm:$0xff] }
  0x5b   : > { %v278_v30 = vsub.f32 %v214_v27, %v246_v28  ;;  %308 = vst [vmem:[%s859_s20 + $0x38] sm:$0xff] %v276_v25  ;;  %309 = vst [vmem:[%s859_s20 + $0x40] sm:$0xff] %v277_v26  ;;  %v279_v34 = vsub.f32 %v215_v29, %v247_v31  ;;  %v280_v35 = vsub.f32 %v216_v32, %v248_v33  ;;  %v217_v36 = vld [vmem:[%s837_s3 + $0x60] sm:$0xff]  ;;  %v218_v38 = vld [vmem:[%s837_s3 + $0x68] sm:$0xff]  ;;  %p588_p9 = por %p587_p7, %p586_p5 }
  0x5c   : > { %v249_v37 = vld [vmem:[%s844_s29 + $0x60] sm:$0xff]  ;;  %v250_v40 = vld [vmem:[%s844_s29 + $0x68] sm:$0xff]  ;;  %v219_v41 = vld [vmem:[%s837_s3 + $0x70] sm:$0xff] }
  0x5d   : > { %310 = vst [vmem:[%s859_s20 + $0x48] sm:$0xff] %v278_v30  ;;  %v281_v39 = vsub.f32 %v217_v36, %v249_v37  ;;  %v251_v42 = vld [vmem:[%s844_s29 + $0x70] sm:$0xff]  ;;  %311 = vst [vmem:[%s859_s20 + $0x50] sm:$0xff] %v279_v34  ;;  %v282_v43 = vsub.f32 %v218_v38, %v250_v40  ;;  %v220_v45 = vld [vmem:[%s837_s3 + $0x78] sm:$0xff]  ;;  %p589_p11 = pnand %p588_p9, %p582_p10 }
  0x5e   : > { %312 = vst [vmem:[%s859_s20 + $0x58] sm:$0xff] %v280_v35  ;;  %v283_v44 = vsub.f32 %v219_v41, %v251_v42  ;;  %v252_v46 = vld [vmem:[%s844_s29 + $0x78] sm:$0xff]  ;;  %v221_v47 = vld [vmem:[%s837_s3 + $0x80] sm:$0xff]  ;;  %v222_v50 = vld [vmem:[%s837_s3 + $0x88] sm:$0xff] }
  0x5f   : > { %313 = vst [vmem:[%s859_s20 + $0x60] sm:$0xff] %v281_v39  ;;  %v284_v48 = vsub.f32 %v220_v45, %v252_v46  ;;  %v253_v49 = vld [vmem:[%s844_s29 + $0x80] sm:$0xff]  ;;  %v254_v51 = vld [vmem:[%s844_s29 + $0x88] sm:$0xff]  ;;  %314 = vst [vmem:[%s859_s20 + $0x68] sm:$0xff] %v282_v43 }
  0x60   : > { %315 = vst [vmem:[%s859_s20 + $0x70] sm:$0xff] %v283_v44  ;;  %v285_v52 = vsub.f32 %v221_v47, %v253_v49  ;;  %v286_v53 = vsub.f32 %v222_v50, %v254_v51  ;;  %v223_v54 = vld [vmem:[%s837_s3 + $0x90] sm:$0xff]  ;;  %v224_v56 = vld [vmem:[%s837_s3 + $0x98] sm:$0xff]  ;;  %v225_v59 = vld [vmem:[%s837_s3 + $0xa0] sm:$0xff] }
  0x61   : > { %v255_v55 = vld [vmem:[%s844_s29 + $0x90] sm:$0xff]  ;;  %316 = vst [vmem:[%s859_s20 + $0x78] sm:$0xff] %v284_v48  ;;  %v256_v58 = vld [vmem:[%s844_s29 + $0x98] sm:$0xff]  ;;  %v257_v60 = vld [vmem:[%s844_s29 + $0xa0] sm:$0xff] }
  0x62   : > { %v287_v57 = vsub.f32 %v223_v54, %v255_v55  ;;  %317 = vst [vmem:[%s859_s20 + $0x80] sm:$0xff] %v285_v52  ;;  %318 = vst [vmem:[%s859_s20 + $0x88] sm:$0xff] %v286_v53  ;;  %v288_v61 = vsub.f32 %v224_v56, %v256_v58  ;;  %v289_v62 = vsub.f32 %v225_v59, %v257_v60  ;;  %v226_v63 = vld [vmem:[%s837_s3 + $0xa8] sm:$0xff]  ;;  %v227_v1 = vld [vmem:[%s837_s3 + $0xb0] sm:$0xff] }
  0x63   : > { %v258_v0 = vld [vmem:[%s844_s29 + $0xa8] sm:$0xff]  ;;  %v259_v3 = vld [vmem:[%s844_s29 + $0xb0] sm:$0xff]  ;;  %v228_v4 = vld [vmem:[%s837_s3 + $0xb8] sm:$0xff] }
  0x64   : > { %319 = vst [vmem:[%s859_s20 + $0x90] sm:$0xff] %v287_v57  ;;  %v290_v2 = vsub.f32 %v226_v63, %v258_v0  ;;  %v260_v5 = vld [vmem:[%s844_s29 + $0xb8] sm:$0xff]  ;;  %320 = vst [vmem:[%s859_s20 + $0x98] sm:$0xff] %v288_v61  ;;  %v291_v6 = vsub.f32 %v227_v1, %v259_v3  ;;  %v229_v8 = vld [vmem:[%s837_s3 + $0xc0] sm:$0xff] }
  0x65   : > { %321 = vst [vmem:[%s859_s20 + $0xa0] sm:$0xff] %v289_v62  ;;  %v292_v7 = vsub.f32 %v228_v4, %v260_v5  ;;  %v261_v9 = vld [vmem:[%s844_s29 + $0xc0] sm:$0xff]  ;;  %v230_v10 = vld [vmem:[%s837_s3 + $0xc8] sm:$0xff]  ;;  %v231_v13 = vld [vmem:[%s837_s3 + $0xd0] sm:$0xff] }
  0x66   : > { %322 = vst [vmem:[%s859_s20 + $0xa8] sm:$0xff] %v290_v2  ;;  %v293_v11 = vsub.f32 %v229_v8, %v261_v9  ;;  %v262_v12 = vld [vmem:[%s844_s29 + $0xc8] sm:$0xff]  ;;  %v263_v14 = vld [vmem:[%s844_s29 + $0xd0] sm:$0xff]  ;;  %323 = vst [vmem:[%s859_s20 + $0xb0] sm:$0xff] %v291_v6 }
  0x67   : > { %324 = vst [vmem:[%s859_s20 + $0xb8] sm:$0xff] %v292_v7  ;;  %v294_v15 = vsub.f32 %v230_v10, %v262_v12  ;;  %v295_v16 = vsub.f32 %v231_v13, %v263_v14  ;;  %v232_v17 = vld [vmem:[%s837_s3 + $0xd8] sm:$0xff]  ;;  %v233_v19 = vld [vmem:[%s837_s3 + $0xe0] sm:$0xff]  ;;  %v234_v22 = vld [vmem:[%s837_s3 + $0xe8] sm:$0xff] }
  0x68   : > { %v264_v18 = vld [vmem:[%s844_s29 + $0xd8] sm:$0xff]  ;;  %325 = vst [vmem:[%s859_s20 + $0xc0] sm:$0xff] %v293_v11  ;;  %v265_v21 = vld [vmem:[%s844_s29 + $0xe0] sm:$0xff]  ;;  %v266_v23 = vld [vmem:[%s844_s29 + $0xe8] sm:$0xff] }
  0x69   : > { %v296_v20 = vsub.f32 %v232_v17, %v264_v18  ;;  %326 = vst [vmem:[%s859_s20 + $0xc8] sm:$0xff] %v294_v15  ;;  %327 = vst [vmem:[%s859_s20 + $0xd0] sm:$0xff] %v295_v16  ;;  %v297_v24 = vsub.f32 %v233_v19, %v265_v21  ;;  %v298_v25 = vsub.f32 %v234_v22, %v266_v23  ;;  %v235_v26 = vld [vmem:[%s837_s3 + $0xf0] sm:$0xff]  ;;  %v236_v28 = vld [vmem:[%s837_s3 + $0xf8] sm:$0xff] }
  0x6a   : > { %v267_v27 = vld [vmem:[%s844_s29 + $0xf0] sm:$0xff]  ;;  %v268_v30 = vld [vmem:[%s844_s29 + $0xf8] sm:$0xff] }
  0x6b   : > { %328 = vst [vmem:[%s859_s20 + $0xd8] sm:$0xff] %v296_v20  ;;  %v299_v29 = vsub.f32 %v235_v26, %v267_v27  ;;  %329 = vst [vmem:[%s859_s20 + $0xe0] sm:$0xff] %v297_v24  ;;  %v300_v31 = vsub.f32 %v236_v28, %v268_v30 }
  0x6c   : > { %330 = vst [vmem:[%s859_s20 + $0xe8] sm:$0xff] %v298_v25 }
  0x6d   : > { %331 = vst [vmem:[%s859_s20 + $0xf0] sm:$0xff] %v299_v29  ;;  %332 = vst [vmem:[%s859_s20 + $0xf8] sm:$0xff] %v300_v31 }
  0x6e   : > { %592 = shalt.err (!%p589_p11)
}
  0x6f   : > { %s593_s7 = scalar_lea.hbm %s949_s17, 4096  ;;  %s597_s4 = scalar_lea.hbm %s1001_s2, 8192 }
  0x70   : > { %p594_p3 = scmp.ne.s32.totalorder %s949_s17, %s593_s7  ;;  %p598_p2 = scmp.lt.u32.totalorder %s949_s17, %s1001_s2 }
  0x71   : > { %p599_p4 = scmp.lt.u32.totalorder %s597_s4, %s593_s7  ;;  %p601_p13 = scmp.lt.u32.totalorder %s593_s7, %s949_s17 }
  0x72   : > { %p595_p8 = pnand %p594_p3, %p1011_p1 }
  0x73   : > { %p600_p6 = por %p599_p4, %p598_p2 }
  0x74   : > { %p596_p0 = pneg %p595_p8 }
  0x75   : > { %p602_p12 = por %p601_p13, %p600_p6 }
  0x77   : > { %p603_p10 = pnand %p602_p12, %p596_p0 }
  0x79   : > { %606 = shalt.err (!%p603_p10)
}
  0x7a   : > { %s656_s23 = smov 128   ;;  %s657_s29 = smov 8  }
  0x7b   : > { %468 = dma.vmem_to_hbm [thread:$0]  (%p1011_p1), %s951_s6, 4096, %s949_s17, %s334_s28, %s656_s23, %s656_s23, %s657_s29  }
  0x7c PF: > { %s362_s20 = sand.u32 1, %s637_s9   ;;  %p1012_p5 = scmp.ne.s32.totalorder %s1007_s22, 0 }
  0x7d   : > { %p1013_p7 = scmp.ge.s32.totalorder %s649_s12, 2  ;;  %s363_s5 = scalar_lea.sflag [#allocation4], %s362_s20 }
  0x7f   : > { %p478_p9 = pnand %p1013_p7, %p1012_p5 }
  0x81   : > { %632 = dma.done.wait (!%p478_p9), %s363_s5, 4096  }
  0x82   : > { %634 = vsyncadd (!%p478_p9), %s363_s5, 4294963200  ;;  %p18_p11 = scmp.ge.s32.totalorder %s698_s15, 4   ;;  %s1014_s9 = smov %s641_s10 }
  0x83   : > { %s1015_s10 = smov %s645_s11  ;;  %s1016_s11 = smov %s710_s18 }
  0x84   : > { %s1017_s12 = smov %s698_s15  ;;  %20 = sbr.rel (!%p18_p11) target bundleno = 7 (0x7), region = 86 }
  0x8b   :  { %368 = vsyncpa [#allocation3], 1 }
  0x8c   :  { %370 = vsyncpa [#allocation3 + $0x1], 1 }
  0x8d   :  { %371 = vsyncpa [#allocation6], 1 }
  0x8e   :  { %373 = vsyncpa [#allocation6 + $0x1], 1 }
  0x8f   :  { %374 = vsyncpa [#allocation4], 1 }
  0x90   :  { %376 = vsyncpa [#allocation4 + $0x1], 1 }

</bundles_post_ra>
